<compile_context>
chip_gen: v6e
topology: v6e:2x2x1
jax: 0.10.0
libtpu: 0.0.40
codegen_flags: <defaults>
</compile_context>

<pallas_src>
import numpy as np
import jax
import jax.numpy as jnp
from jax import lax
from jax.experimental import pallas as pl
from jax.experimental.pallas import tpu as pltpu

EPS = 1e-5  # nn.BatchNorm1d default eps


def _pick_vmem_limit():
    # Raise the scoped-VMEM limit toward physical capacity; clamp on v7x.
    try:
        cap = pltpu.get_tpu_info().vmem_capacity_bytes
    except Exception:
        cap = 64 * 1024 * 1024  # conservative fallback, safe on every generation
    return int(min(100 * 1024 * 1024, cap * 3 // 4))


_VMEM_LIMIT = _pick_vmem_limit()


def _full_spec(shape):
    nd = len(shape)
    return pl.BlockSpec(shape, lambda i, nd=nd: (0,) * nd)


# ------------------------------------------------------------------ FC kernel
def _fc_kernel(x_ref, w_ref, b_ref, o_ref):
    o_ref[...] = (
        jnp.dot(x_ref[...], w_ref[...], preferred_element_type=jnp.float32)
        + b_ref[...]
    )


def _fc_grid_steps(L0, max_steps=8):
    for d in range(min(L0, max_steps), 0, -1):
        if L0 % d == 0:
            return d
    return 1


def fc_layer(x, w, b2d):
    """x:(B,Din) @ w:(Din,256*L0) + b, tiled over Dout so the weight DMA pipelines."""
    B, Din = x.shape
    Dout = w.shape[1]
    L0 = Dout // 256
    n_steps = _fc_grid_steps(L0)
    tn = Dout // n_steps                       # multiple of 256 -> lane aligned
    return pl.pallas_call(
        _fc_kernel,
        out_shape=jax.ShapeDtypeStruct((B, Dout), jnp.float32),
        grid=(n_steps,),
        in_specs=[
            pl.BlockSpec((B, Din), lambda j: (0, 0)),
            pl.BlockSpec((Din, tn), lambda j: (0, j)),
            pl.BlockSpec((1, tn), lambda j: (0, j)),
        ],
        out_specs=pl.BlockSpec((B, tn), lambda j: (0, j)),
        compiler_params=pltpu.CompilerParams(
            dimension_semantics=("parallel",),
            vmem_limit_bytes=_VMEM_LIMIT,
        ),
    )(x, w, b2d)


# --------------------------------------------------- fused conv-stack kernel
def _make_convstack_kernel(B, L0, chans):
    n_layers = len(chans) - 1
    BL = B * L0

    def kernel(*refs):
        x_ref, out_ref = refs[0], refs[-1]
        p_refs = refs[1:-1]

        # Activations live as a list of per-phase (B*L0, C) blocks:
        # block i, row r = b*L0 + q  <->  signal position q*P + i of batch b.
        blocks = [x_ref[...]]                               # (BL, 256)
        idx = 0
        for li in range(n_layers):
            cout = chans[li + 1]
            w = p_refs[idx][...]                            # (Cin, 4*Cout) fused taps
            idx += 1
            P = len(blocks)

            # One fused-tap MXU dot per phase block (same RHS push for all blocks).
            T = [jnp.dot(Xb, w, preferred_element_type=jnp.float32) for Xb in blocks]

            def tap(i, k, T=T, cout=cout):                  # lane slice = X_i @ W_k
                return T[i][:, k * cout:(k + 1) * cout]

            # Boundary phases: per-batch q -> q -/+ 1 via XLU roll + VPU mask
            # (rows that would cross a batch boundary are zeroed = conv zero pad).
            q = lax.broadcasted_iota(jnp.int32, (BL, cout), 0) % L0
            prev_wrap = jnp.where(q == 0, 0.0,
                                  pltpu.roll(tap(P - 1, 3), shift=1, axis=0))
            next_wrap = jnp.where(q == L0 - 1, 0.0,
                                  pltpu.roll(tap(0, 0), shift=BL - 1, axis=0))

            # Transposed-conv identities (x = layer input signal):
            #   y[2m]   = x[m]   @ W1 + x[m-1] @ W3
            #   y[2m+1] = x[m+1] @ W0 + x[m]   @ W2
            new_blocks = []
            for i in range(P):
                even = tap(i, 1) + (tap(i - 1, 3) if i >= 1 else prev_wrap)
                odd = (tap(i + 1, 0) if i + 1 < P else next_wrap) + tap(i, 2)
                new_blocks.append(even)                     # output phase 2i
                new_blocks.append(odd)                      # output phase 2i+1
            blocks = new_blocks

            if li < n_layers - 1:
                # BatchNorm1d (training mode, biased variance), single-pass stats.
                # Conv bias is omitted for these layers: a per-channel constant is
                # exactly cancelled by the batch-mean subtraction.
                g = p_refs[idx][...]
                be = p_refs[idx + 1][...]
                idx += 2
                n_rows = float(len(blocks) * BL)
                s = blocks[0].sum(axis=0, keepdims=True)
                ss = (blocks[0] * blocks[0]).sum(axis=0, keepdims=True)
                for Xb in blocks[1:]:
                    s = s + Xb.sum(axis=0, keepdims=True)
                    ss = ss + (Xb * Xb).sum(axis=0, keepdims=True)
                mu = s * (1.0 / n_rows)
                var = jnp.maximum(ss * (1.0 / n_rows) - mu * mu, 0.0)
                scale = g * lax.rsqrt(var + EPS)
                shift = be - mu * scale
                blocks = [jnp.maximum(Xb * scale + shift, 0.0) for Xb in blocks]
            else:
                b = p_refs[idx][...]                        # final layer keeps bias
                idx += 1
                blocks = [jnp.tanh(Xb + b) for Xb in blocks]

        # Lane-dense epilogue: one store of (B*L0, n_phase*c_out); column i*C + c
        # is exactly position-major interleaved order, so the wrapper reshape to
        # (B, signal_length, C) is metadata-only.
        out_ref[...] = jnp.concatenate(blocks, axis=-1)

    return kernel


def conv_stack_layer(h2, flat_params, B, L0, chans):
    n_layers = len(chans) - 1
    n_phase = 2 ** n_layers
    c_out = chans[-1]

    args = [h2]
    in_specs = [_full_spec(h2.shape)]
    for p in flat_params:
        args.append(p)
        in_specs.append(_full_spec(p.shape))

    return pl.pallas_call(
        _make_convstack_kernel(B, L0, chans),
        out_shape=jax.ShapeDtypeStruct((B * L0, n_phase * c_out), jnp.float32),
        grid=(1,),
        in_specs=in_specs,
        out_specs=_full_spec((B * L0, n_phase * c_out)),
        compiler_params=pltpu.CompilerParams(
            dimension_semantics=("arbitrary",),
            vmem_limit_bytes=_VMEM_LIMIT,
        ),
    )(*args)


# ------------------------------------------------------------------ Generator
class GeneratorPallas:
    def __init__(self, noise_dim, metadata_dim, num_channels, signal_length, key):
        self.noise_dim = noise_dim
        self.metadata_dim = metadata_dim
        self.num_channels = num_channels
        self.signal_length = signal_length
        self.initial_size = signal_length // 16

        din = noise_dim + metadata_dim
        L0 = self.initial_size
        dout = 256 * L0
        keys = jax.random.split(key, 10)

        def uni(k, shape, fan_in):
            bound = 1.0 / np.sqrt(fan_in)
            return jax.random.uniform(k, shape, jnp.float32, -bound, bound)

        # torch-equivalent fc params (used by the pure-JAX reference); column
        # index o maps to (channel c, position l) via o = c*L0 + l.
        self.fc_w = uni(keys[0], (din, dout), din)
        self.fc_b = uni(keys[1], (dout,), din)
        # kernel-layout fc params: columns permuted to (l, c) order so the fc
        # output reshapes to (B*L0, 256) with zero data movement.
        self.fc_w_lc = jnp.transpose(
            self.fc_w.reshape(din, 256, L0), (0, 2, 1)
        ).reshape(din, dout)
        self.fc_b_lc = jnp.transpose(self.fc_b.reshape(256, L0)).reshape(1, dout)

        self.chans = [256, 128, 64, 32, num_channels]
        self.conv_params = []        # torch layout, for the reference
        flat = []                    # fused-tap layout, flat kernel arg list
        ki = 2
        for i in range(4):
            cin, cout = self.chans[i], self.chans[i + 1]
            w = uni(keys[ki], (cin, cout, 4), cout * 4)   # torch ConvTranspose1d layout
            ki += 1
            b = uni(keys[ki], (cout,), cout * 4)
            ki += 1
            gamma = jnp.ones((cout,), jnp.float32)
            beta = jnp.zeros((cout,), jnp.float32)
            self.conv_params.append((w, b, gamma, beta))
            # fused tap weight: (Cin, 4*Cout), column = k*Cout + c
            w_fused = jnp.transpose(w, (0, 2, 1)).reshape(cin, 4 * cout)
            flat.append(w_fused)
            if i < 3:
                # bias dropped (cancelled by training-mode BN); pass gamma/beta
                flat.append(gamma.reshape(1, cout))
                flat.append(beta.reshape(1, cout))
            else:
                flat.append(b.reshape(1, cout))
        self.conv_kernel_flat = flat

    def __call__(self, noise, metadata):
        x = jnp.concatenate([noise, metadata], axis=1)       # (B, Din) glue
        h = fc_layer(x, self.fc_w_lc, self.fc_b_lc)          # (B, 256*L0), (l,c) cols
        B = h.shape[0]
        L0 = self.initial_size
        h2 = h.reshape(B * L0, 256)                          # metadata-only reshape
        y = conv_stack_layer(h2, self.conv_kernel_flat, B, L0, self.chans)
        y = y.reshape(B, 16 * L0, self.num_channels)         # metadata-only reshape
        # TODO(synk): final NCL transpose left to XLA (see header).
        return jnp.transpose(y, (0, 2, 1))                   # (B, C, L)


# -------------------------------------------------- pure-JAX reference (checking)
def reference_forward(gen, noise, metadata):
    x = jnp.concatenate([noise, metadata], axis=1)
    x = jnp.dot(x, gen.fc_w, precision=lax.Precision.HIGHEST) + gen.fc_b
    x = x.reshape(x.shape[0], 256, gen.initial_size)          # NCL
    K, s, p = 4, 2, 1
    for i, (w, b, g, be) in enumerate(gen.conv_params):
        wc = jnp.flip(jnp.transpose(w, (1, 0, 2)), axis=-1)   # (Cout, Cin, K)
        x = lax.conv_general_dilated(
            x, wc, window_strides=(1,), padding=[(K - 1 - p, K - 1 - p)],
            lhs_dilation=(s,), dimension_numbers=("NCH", "OIH", "NCH"),
            precision=lax.Precision.HIGHEST,
        )
        x = x + b[None, :, None]
        if i < 3:
            mu = jnp.mean(x, axis=(0, 2), keepdims=True)
            var = jnp.mean((x - mu) ** 2, axis=(0, 2), keepdims=True)
            x = (x - mu) / jnp.sqrt(var + EPS)
            x = x * g[None, :, None] + be[None, :, None]
            x = jnp.maximum(x, 0.0)
        else:
            x = jnp.tanh(x)
    return x


if __name__ == "__main__":
    # Small shapes consistent with the module (signal_length divisible by 16).
    noise_dim, metadata_dim, num_channels, signal_length = 16, 8, 12, 64
    batch = 2

    key = jax.random.PRNGKey(0)
    kp, kn, km = jax.random.split(key, 3)

    gen = GeneratorPallas(noise_dim, metadata_dim, num_channels, signal_length, kp)
    noise = jax.random.normal(kn, (batch, noise_dim), jnp.float32)
    metadata = jax.random.normal(km, (batch, metadata_dim), jnp.float32)

    out = gen(noise, metadata)
    out = jax.block_until_ready(out)
    assert out.shape == (batch, num_channels, signal_length), out.shape

    ref = reference_forward(gen, noise, metadata)
    np.testing.assert_allclose(np.asarray(out), np.asarray(ref), rtol=1e-3, atol=1e-3)

    print("KERNEL_OK")
</pallas_src>

<mosaic_0001>
module attributes {stable_mosaic.version = 11 : i64} {
  func.func @_fc_kernel(%arg0: i32, %arg1: memref<2x24xf32, #tpu.memory_space<vmem>>, %arg2: memref<24x256xf32, #tpu.memory_space<vmem>>, %arg3: memref<1x256xf32, #tpu.memory_space<vmem>>, %arg4: memref<2x256xf32, #tpu.memory_space<vmem>>) attributes {dimension_semantics = [#tpu.dimension_semantics<parallel>], iteration_bounds = array<i64: 4>, scalar_prefetch = 0 : i64, scratch_operands = 0 : i64, tpu.core_type = #tpu.core_type<tc>, window_params = [{pipeline_mode = #tpu.pipeline_mode<synchronous>, transform_indices = @transform_0, window_bounds = array<i64: 2, 24>}, {transform_indices = @transform_1, window_bounds = array<i64: 24, 256>}, {transform_indices = @transform_2, window_bounds = array<i64: 1, 256>}, {transform_indices = @transform_3, window_bounds = array<i64: 2, 256>}]} {
    %c0 = arith.constant 0 : index
    %c0_0 = arith.constant 0 : index
    %0 = vector.load %arg1[%c0, %c0_0] : memref<2x24xf32, #tpu.memory_space<vmem>>, vector<2x24xf32>
    %c0_1 = arith.constant 0 : index
    %c0_2 = arith.constant 0 : index
    %1 = vector.load %arg2[%c0_1, %c0_2] : memref<24x256xf32, #tpu.memory_space<vmem>>, vector<24x256xf32>
    %cst = arith.constant dense<0.000000e+00> : vector<2x256xf32>
    %2 = tpu.matmul %0, %1, %cst {dimension_numbers = #tpu.dot_dimension_numbers<[1], [0], [0], [1], [0, 0, 1, 1], [], []>} : vector<2x24xf32>, vector<24x256xf32>, vector<2x256xf32> -> vector<2x256xf32>
    %c0_3 = arith.constant 0 : index
    %c0_4 = arith.constant 0 : index
    %3 = vector.load %arg3[%c0_3, %c0_4] : memref<1x256xf32, #tpu.memory_space<vmem>>, vector<1x256xf32>
    %4 = vector.broadcast %3 : vector<1x256xf32> to vector<2x256xf32>
    %5 = arith.addf %2, %4 : vector<2x256xf32>
    %c0_5 = arith.constant 0 : index
    %c0_6 = arith.constant 0 : index
    %6 = vector.load %arg4[%c0_5, %c0_6] : memref<2x256xf32, #tpu.memory_space<vmem>>, vector<2x256xf32>
    tpu.vector_store %arg4[%c0_5, %c0_6], %5 {strides = array<i32>} : memref<2x256xf32, #tpu.memory_space<vmem>>, vector<2x256xf32>,
    return
  }
  func.func @transform_0(%arg0: i32) -> (i32, i32) {
    %c0_i32 = arith.constant 0 : i32
    %c0_i32_0 = arith.constant 0 : i32
    %c0_i32_1 = arith.constant 0 : i32
    return %c0_i32, %c0_i32_0 : i32, i32
  }
  func.func @transform_1(%arg0: i32) -> (i32, i32) {
    %c0_i32 = arith.constant 0 : i32
    %c0_i32_0 = arith.constant 0 : i32
    return %c0_i32, %arg0 : i32, i32
  }
  func.func @transform_2(%arg0: i32) -> (i32, i32) {
    %c0_i32 = arith.constant 0 : i32
    %c0_i32_0 = arith.constant 0 : i32
    return %c0_i32, %arg0 : i32, i32
  }
  func.func @transform_3(%arg0: i32) -> (i32, i32) {
    %c0_i32 = arith.constant 0 : i32
    %c0_i32_0 = arith.constant 0 : i32
    return %c0_i32, %arg0 : i32, i32
  }
}

</mosaic_0001>

<bundles_post_ra>
// kernel: tpu_custom_call.1
= control target key start
LH: loop header
LB: loop body
LE: loop exit
PB: predicated region body
PF: predicated region fallthrough
CT: control target
= control target key end

     0   :  { %8 = vsyncpa [#allocation3], 0  ;;  %s935_s0 = inlined_call_operand.hbm [shape: f32[2,24], index: 0, kind: input, shape index: {}]   ;;  %s936_s1 = inlined_call_operand.hbm [shape: f32[24,1024], index: 1, kind: input, shape index: {}]   ;;  %s937_s2 = inlined_call_operand.hbm [shape: f32[1,1024], index: 2, kind: input, shape index: {}]   ;;  %s938_s3 = inlined_call_operand.hbm [shape: f32[2,1024], index: 3, kind: output, shape index: {}]  }
   0x1   :  { %9 = vsyncpa [#allocation6], 0 }
   0x2   :  { %11 = vsyncpa [#allocation6 + $0x1], 0 }
   0x3   :  { %12 = vsyncpa [#allocation4], 0 }
   0x4   :  { %14 = vsyncpa [#allocation4 + $0x1], 0  ;;  %s734_s12 = smov 0   ;;  %s736_s13 = smov 0  }
   0x5   :  { %s738_s14 = smov 0   ;;  %s740_s15 = smov 0  }
   0x6 LB: > { %s755_s16 = sadd.s32 1, %s704_s15   ;;  %s48_s17 = sadd.s32 1, %s700_s14  ;;  %s704_s15 = sphi %s740_s15, %s957_s15   ;;  %s700_s14 = sphi %s738_s14, %s956_s14   ;;  %s696_s13 = sphi %s736_s13, %s955_s13   ;;  %s692_s12 = sphi %s734_s12, %s954_s12  }
   0x7   : > { %s45_s18 = ssub.s32 %s704_s15, %s755_s16  ;;  %p55_p0 = scmp.ne.s32.totalorder %s700_s14, %s696_s13 }
   0x8   : > { %p46_p1 = scmp.eq.s32.totalorder %s45_s18, 0  ;;  %p56_p2 = scmp.eq.s32.totalorder %s704_s15, 0 }
   0x9   : > { %p514_p3 = scmp.lt.s32.totalorder %s704_s15, 4  ;;  %s148_s20 = sand.u32 1, %s704_s15  }
   0xa   : > { %s765_s19 = scalar_select %p46_p1, %s700_s14, %s48_s17  }
   0xb   : > { %p57_p4 = por %p56_p2, %p55_p0  ;;  %s150_s21 = sand.u32 1, %s700_s14  }
   0xc   : > { %s486_s22 = smul.u32 48, %s150_s21  ;;  %s483_s23 = sshll.u32 %s704_s15, 8 }
   0xd   : > { %s778_s26 = scalar_lea.hbm %s936_s1, %s483_s23  ;;  %p780_p5 = pnand %p514_p3, %p57_p4 }
   0xe   : > { %s152_s28 = scalar_lea.vmem [#allocation5], %s486_s22  ;;  %s786_s30 = scalar_lea.sflag [#allocation6], %s148_s20 }
   0xf   : > { %s159_s29 = sshll.u32 %s152_s28, 4  ;;  %s554_s4 = scalar_lea.hbm %s778_s26, 768  ;;  %s784_s29 = int_to_ptr.vmem [resolvable:$true] %s159_s29 }
  0x10   : > { %p555_p6 = scmp.ne.s32.totalorder %s778_s26, %s554_s4  ;;  %p939_p7 = pneg %p780_p5 }
  0x11   : > { %s559_s7 = scalar_lea.hbm %s936_s1, 3072  ;;  %p560_p10 = scmp.lt.s32.totalorder %s778_s26, %s936_s1 }
  0x12   : > { %p557_p8 = pnand %p939_p7, %p555_p6  ;;  %p561_p11 = scmp.lt.s32.totalorder %s559_s7, %s554_s4 }
  0x14   : > { %p558_p9 = pneg %p557_p8  ;;  %p562_p12 = por %p561_p11, %p560_p10 }
  0x16   : > { %p563_p13 = pnand %p562_p12, %p558_p9 }
  0x18   : > { %566 = shalt.err (!%p563_p13)
}
  0x19   : > { %s567_s10 = scalar_lea.vmem %s784_s29, 768  ;;  %s706_s11 = smov [#allocation5]  }
  0x1a   : > { %p568_p1 = scmp.ne.s32.totalorder %s784_s29, %s567_s10  ;;  %s572_s17 = sshll.u32 %s706_s11, 4  ;;  %s573_s17 = int_to_ptr.vmem [resolvable:$false] %s572_s17 }
  0x1b   : > { %s574_s18 = scalar_lea.vmem %s573_s17, 1536  ;;  %p575_p4 = scmp.lt.s32.totalorder %s784_s29, %s573_s17 }
  0x1c   : > { %p570_p2 = pnand %p568_p1, %p939_p7  ;;  %p576_p6 = scmp.lt.s32.totalorder %s574_s18, %s567_s10 }
  0x1e   : > { %p571_p3 = pneg %p570_p2  ;;  %p577_p8 = por %p576_p6, %p575_p4 }
  0x20   : > { %p578_p10 = pnand %p577_p8, %p571_p3 }
  0x22   : > { %581 = shalt.err (!%p578_p10)
}
  0x23   : > { %s707_s20 = smov 1024   ;;  %s708_s22 = smov 256  }
  0x24   : > { %s709_s23 = smov 16   ;;  %s814_s24 = sadd.s32 4294967295, %s704_s15  }
  0x25   : > { %505 = dma.hbm_to_vmem [thread:$0]  (!%p780_p5), %s778_s26, 768, %s784_s29, %s786_s30, %s707_s20, %s708_s22, %s709_s23  }
  0x26   : > { %s463_s25 = sadd.s32 4294967294, %s704_s15   ;;  %p61_p9 = scmp.ne.s32.totalorder %s696_s13, %s692_s12 }
  0x27   : > { %p941_p11 = scmp.eq.s32.totalorder %s814_s24, 0  ;;  %p111_p12 = scmp.eq.s32.totalorder %s814_s24, 3 }
  0x28   : > { %p117_p13 = scmp.eq.s32.totalorder %s463_s25, 3  ;;  %p464_p1 = scmp.ge.s32.totalorder %s704_s15, 1 }
  0x29   : > { %p824_p2 = por %p941_p11, %p61_p9  ;;  %p831_p3 = por %p111_p12, %p55_p0 }
  0x2a   : > { %p835_p4 = por %p117_p13, %p61_p9  ;;  %p124_p6 = scmp.lt.s32.totalorder %s704_s15, 5 }
  0x2b   : > { %s944_s28 = scalar_select %p824_p2, 1, 0 }
  0x2c   : > { %s945_s26 = scalar_select %p831_p3, 1, 0 }
  0x2d   : > { %s946_s29 = scalar_select %p835_p4, 1, 0 }
  0x2e   : > { %p840_p8 = pnand %p464_p1, %p124_p6  ;;  %s710_s5 = smov [#allocation2]  }
  0x2f   : > { %s137_s6 = sshll.u32 %s710_s5, 4  ;;  %s469_s7 = sshll.u32 %s150_s21, 1  ;;  %s138_s6 = int_to_ptr.vmem [resolvable:$true] %s137_s6 }
  0x30   : > { %p498_p10 = pneg %p840_p8  ;;  %s484_s8 = sshll.u32 %s704_s15, 5 }
  0x31   : > { %s173_s9 = scalar_lea.vmem [#allocation7], %s469_s7  ;;  %s854_s18 = scalar_lea.hbm %s937_s2, %s484_s8 }
  0x32   : > { %s181_s10 = sshll.u32 %s173_s9, 4  ;;  %p499_p0 = pnand %p498_p10, %p941_p11  ;;  %s856_s10 = int_to_ptr.vmem [resolvable:$true] %s181_s10 }
  0x33   : > { %s593_s20 = scalar_lea.vmem %s138_s6, 32  ;;  %p601_p6 = scmp.lt.s32.totalorder %s138_s6, %s138_s6 }
  0x34   : > { %p584_p9 = pneg %p499_p0  ;;  %p594_p12 = scmp.ne.s32.totalorder %s138_s6, %s593_s20 }
  0x35   : > { %p602_p7 = scmp.lt.s32.totalorder %s593_s20, %s593_s20 }
  0x36   : > { %p596_p13 = pnand %p594_p12, %p584_p9 }
  0x37   : > { %p603_p4 = por %p602_p7, %p601_p6 }
  0x38   : > { %p597_p1 = pneg %p596_p13 }
  0x3a   : > { %p604_p3 = pnand %p603_p4, %p597_p1 }
  0x3c   : > { %607 = shalt.err (!%p604_p3)
}
  0x3d   : > { %501 = dma.hbm_to_vmem [thread:$0]  (!%p499_p0), %s935_s0, 32, %s138_s6, [#allocation3]  }
  0x3e   : > { %s608_s23 = scalar_lea.hbm %s854_s18, 32  ;;  %p948_p11 = pneg %p780_p5 }
  0x3f   : > { %p609_p10 = scmp.ne.s32.totalorder %s854_s18, %s608_s23  ;;  %s613_s7 = scalar_lea.hbm %s937_s2, 128 }
  0x40   : > { %p614_p7 = scmp.lt.s32.totalorder %s854_s18, %s937_s2  ;;  %p615_p3 = scmp.lt.s32.totalorder %s613_s7, %s608_s23 }
  0x41   : > { %p611_p2 = pnand %p609_p10, %p948_p11 }
  0x42   : > { %p616_p4 = por %p615_p3, %p614_p7 }
  0x43   : > { %p612_p9 = pneg %p611_p2 }
  0x45   : > { %p617_p12 = pnand %p616_p4, %p612_p9 }
  0x47   : > { %620 = shalt.err (!%p617_p12)
}
  0x48   : > { %s621_s6 = scalar_lea.vmem %s856_s10, 32  ;;  %s711_s11 = smov [#allocation7]  }
  0x49   : > { %p622_p0 = scmp.ne.s32.totalorder %s856_s10, %s621_s6  ;;  %s626_s17 = sshll.u32 %s711_s11, 4  ;;  %s627_s17 = int_to_ptr.vmem [resolvable:$false] %s626_s17 }
  0x4a   : > { %s628_s20 = scalar_lea.vmem %s627_s17, 64  ;;  %p629_p1 = scmp.lt.s32.totalorder %s856_s10, %s627_s17 }
  0x4b   : > { %p624_p2 = pnand %p622_p0, %p948_p11  ;;  %p630_p6 = scmp.lt.s32.totalorder %s628_s20, %s621_s6 }
  0x4d   : > { %p625_p13 = pneg %p624_p2  ;;  %p631_p10 = por %p630_p6, %p629_p1 }
  0x4f   : > { %p632_p7 = pnand %p631_p10, %p625_p13 }
  0x51   : > { %635 = shalt.err (!%p632_p7)
}
  0x52   : > { %508 = dma.hbm_to_vmem [thread:$0]  (!%p780_p5), %s854_s18, 32, %s856_s10, %s786_s30  }
  0x53   : > { %190 = sbr.rel (%p840_p8) target bundleno = 313 (0x139), region = 32  ;;  %p949_p9 = scmp.eq.s32.totalorder (!%p840_p8), %s814_s24, 0 }
  0x58   : > { %679 = dma.done.wait (%p949_p9), [#allocation3], 32   ;;  %p950_p3 = pmov %p949_p9 }
  0x59   : > { %s196_s21 = sand.u32 1, %s814_s24   ;;  %s892_s22 = sand.u32 1, %s696_s13  }
  0x5a   : > { %681 = vsyncadd (%p950_p3), [#allocation3], 4294967264  ;;  %s487_s27 = smul.u32 48, %s892_s22  ;;  %s197_s23 = scalar_lea.sflag [#allocation6], %s196_s21 }
  0x5b   : > { %p951_p5 = scmp.ne.s32.totalorder %s944_s28, 0 }
  0x5c   : > { %s200_s25 = scalar_lea.vmem [#allocation5], %s487_s27 }
  0x5d   : > { %683 = dma.done.wait (%p951_p5), %s197_s23, 800  }
  0x5e   : > { %685 = vsyncadd (%p951_p5), %s197_s23, 4294966496  ;;  %v712_v0 = vmov 0.0   ;;  %v246_v1 = vld [vmem:[%s200_s25 + $0x28] sm:$0xff]  ;;  %v245_v2 = vld [vmem:[%s200_s25 + $0x20] sm:$0xff]  ;;  %vm259_vm0 = vcmask 195584   ;;  %v249_v8 = vlaneseq  ;;  %s474_s30 = sshll.u32 %s892_s22, 1 }
  0x5f   : > { %327 = vmatprep.mubr.f32.mxu0 %v712_v0  ;;  %v244_v3 = vld [vmem:[%s200_s25 + $0x18] sm:$0xff]  ;;  %289 = vmatprep.subr.mxu0 %v246_v1  ;;  %v243_v4 = vld [vmem:[%s200_s25 + $0x10] sm:$0xff]  ;;  %v242_v5 = vld [vmem:[%s200_s25 + $0x8] sm:$0xff]  ;;  %s209_s28 = scalar_lea.vmem [#allocation7], %s474_s30  ;;  %s475_s4 = sshll.u32 %s892_s22, 2 }
  0x60   : > { %290 = vmatpush1.msra.mxu0 %v245_v2  ;;  %v241_v6 = vld [vmem:[%s200_s25] sm:$0xff]  ;;  %v240_v7 = vld [vmem:[#allocation2] sm:$0x3]  ;;  %v250_v9 = vshrl.u32 %v249_v8, 7  ;;  %s485_s10 = sshll.u32 %s814_s24, 6  ;;  %s236_s18 = scalar_lea.vmem [#allocation8], %s475_s4 }
  0x61   : > { %291 = vmatprep.subr.mxu0 %v244_v3  ;;  %v247_v12 = vld [vmem:[%s209_s28] sm:$0x3]  ;;  %s361_s5 = sshll.u32 %s236_s18, 4  ;;  %s359_s9 = scalar_lea.hbm %s938_s3, %s485_s10  ;;  %s362_s5 = int_to_ptr.vmem [resolvable:$true] %s361_s5 }
  0x62   : > { %292 = vmatpush1.msra.mxu0 %v243_v4  ;;  %v251_v10 = vsub.s32 0, %v250_v9  ;;  %v255_v11 = vsub.s32 1, %v250_v9  ;;  %s347_s6 = scalar_lea.sflag [#allocation4], %s892_s22  ;;  %s636_s11 = scalar_lea.vmem %s362_s5, 64 }
  0x63   : > { %293 = vmatprep.subr.mxu0 %v242_v5  ;;  %p637_p8 = scmp.ne.s32.totalorder %s362_s5, %s636_s11  ;;  %p952_p4 = scmp.ne.s32.totalorder %s945_s26, 0 }
  0x64   : > { %294 = vmatpush1.msra.mxu0 %v241_v6  ;;  %v252_v13 = vrot.slane %v247_v12, %v251_v10  ;;  %v256_v14 = vrot.slane %v247_v12, %v255_v11  ;;  %s713_s17 = smov [#allocation8]  }
  0x65   : > { %476 = vmatmul.mubr.msk.f32.vlgmr.msra.gmra.mxu0 %vm259_vm0, %v240_v7  ;;  %p638_p12 = pnand %p637_p8, %p952_p4  ;;  %s640_s20 = sshll.u32 %s713_s17, 4  ;;  %s641_s20 = int_to_ptr.vmem [resolvable:$false] %s640_s20 }
  0x66   : > { %s642_s24 = scalar_lea.vmem %s641_s20, 128  ;;  %p643_p11 = scmp.lt.s32.totalorder %s362_s5, %s641_s20 }
  0x67   : > { %p639_p0 = pneg %p638_p12  ;;  %p644_p2 = scmp.lt.s32.totalorder %s642_s24, %s636_s11 }
  0x69   : > { %p645_p13 = por %p644_p2, %p643_p11 }
  0x6b   : > { %p646_p1 = pnand %p645_p13, %p639_p0 }
 0x125   : > { %v329_v15 = vpop.f32.mrf.mxu0 }
 0x126   : > { %v330_v17 = vadd.f32 %v329_v15, %v252_v13 }
 0x127   : > { %v331_v16 = vpop.f32.mrf.mxu0 }
 0x128   : > { %v332_v18 = vadd.f32 %v331_v16, %v256_v14 }
 0x12a   : > { %v336_v19 = vcombine.low %v330_v17, %v332_v18 }
 0x12c   : > { %477 = vst.sshfl [vmem:[%s236_s18] sm:$0x33 pattern:$0x76325410] %v336_v19 }
 0x12d   : > { %649 = shalt.err (!%p646_p1)
}
 0x12e   : > { %s650_s21 = scalar_lea.hbm %s359_s9, 64  ;;  %s654_s23 = scalar_lea.hbm %s938_s3, 256 }
 0x12f   : > { %p651_p6 = scmp.ne.s32.totalorder %s359_s9, %s650_s21  ;;  %p655_p9 = scmp.lt.s32.totalorder %s359_s9, %s938_s3 }
 0x130   : > { %p656_p3 = scmp.lt.s32.totalorder %s654_s23, %s650_s21 }
 0x131   : > { %p652_p10 = pnand %p651_p6, %p952_p4 }
 0x132   : > { %p657_p5 = por %p656_p3, %p655_p9 }
 0x133   : > { %p653_p7 = pneg %p652_p10 }
 0x135   : > { %p658_p8 = pnand %p657_p5, %p653_p7 }
 0x137   : > { %661 = shalt.err (!%p658_p8)
}
 0x138   : > { %496 = dma.vmem_to_hbm [thread:$0]  (%p952_p4), %s362_s5, 64, %s359_s9, %s347_s6  }
 0x139 PF: > { %p516_p12 = scmp.ge.s32.totalorder %s704_s15, 2  ;;  %s373_s28 = sand.u32 1, %s692_s12  }
 0x13a   : > { %p953_p0 = scmp.ne.s32.totalorder %s946_s29, 0  ;;  %s374_s4 = scalar_lea.sflag [#allocation4], %s373_s28 }
 0x13c   : > { %p510_p11 = pnand %p516_p12, %p953_p0 }
 0x13e   : > { %p511_p2 = pneg %p510_p11 }
 0x140   : > { %687 = dma.done.wait (%p511_p2), %s374_s4, 64  }
 0x141   : > { %689 = vsyncadd (%p511_p2), %s374_s4, 4294967232  ;;  %p17_p13 = scmp.ge.s32.totalorder %s755_s16, 6   ;;  %s954_s12 = smov %s696_s13 }
 0x142   : > { %s955_s13 = smov %s700_s14  ;;  %s956_s14 = smov %s765_s19 }
 0x143   : > { %s957_s15 = smov %s755_s16  ;;  %19 = sbr.rel (!%p17_p13) target bundleno = 6 (0x6), region = 93 }
 0x148   :  { %379 = vsyncpa [#allocation3], 1 }
 0x149   :  { %381 = vsyncpa [#allocation3 + $0x1], 1 }
 0x14a   :  { %382 = vsyncpa [#allocation6], 1 }
 0x14b   :  { %384 = vsyncpa [#allocation6 + $0x1], 1 }
 0x14c   :  { %385 = vsyncpa [#allocation4], 1 }
 0x14d   :  { %387 = vsyncpa [#allocation4 + $0x1], 1 }

</bundles_post_ra>
